<compile_context>
chip_gen: v5e
topology: v5e:2x2
jax: 0.10.0
libtpu: 0.0.40
codegen_flags: <defaults>
</compile_context>

<pallas_src>
import jax
import jax.numpy as jnp
import numpy as np
from jax import lax
from jax.experimental import pallas as pl
from jax.experimental.pallas import tpu as pltpu


def _round_up(v, m):
    return ((int(v) + m - 1) // m) * m


def _lr_kernel(blk_lo_ref, blk_hi_ref, x_ref, cum_ref, dur_ref, o_ref):
    # blk_lo_ref / blk_hi_ref : (B, KB) int32 in SMEM (scalar prefetch)
    # x_ref   : (1, C, TK)  native dtype
    # cum_ref : (1, TK, 1)  int32 inclusive cumsum of durations
    # dur_ref : (1, TK, 1)  int32 durations (>= 0)
    # o_ref   : (1, C, TN)  float32, revisited across the K grid axis
    b = pl.program_id(0)
    j = pl.program_id(1)
    k = pl.program_id(2)
    tn = o_ref.shape[2]
    tk = x_ref.shape[2]
    j_lo = j * tn
    j_hi = j_lo + tn

    @pl.when(k == 0)
    def _init():
        o_ref[...] = jnp.zeros_like(o_ref)

    lo = blk_lo_ref[b, k]   # first output frame this K-block can cover
    hi = blk_hi_ref[b, k]   # one past the last output frame it can cover

    @pl.when(jnp.logical_and(lo < j_hi, hi > j_lo))
    def _accumulate():
        cum = cum_ref[0]                       # (TK, 1)
        dur = dur_ref[0]                       # (TK, 1)
        start = cum - dur                      # (TK, 1)
        # output-frame indices of this tile, on the lane axis
        jj = j_lo + lax.broadcasted_iota(jnp.int32, (tk, tn), 1)   # (TK, TN)
        # band test start <= jj < start+dur fused into one unsigned compare
        sel = (jj - start).astype(jnp.uint32) < dur.astype(jnp.uint32)
        sel = sel.astype(x_ref.dtype)          # exact 0/1 weights; bf16 if x is bf16
        # (C, TK) @ (TK, TN) -> (C, TN), lane-dense output, f32 accumulation
        o_ref[0] += jnp.dot(x_ref[0], sel, preferred_element_type=jnp.float32)


def length_regulator(x, duration, x_lengths=None, hoplen=256, sr=22050,
                     max_len=None, tile_n=256, tile_k=128):
    """JAX/Pallas equivalent of LengthRegulator.forward.

    x:         (B, C, T)
    duration:  (B, T) integer durations (a (B, 1, T) input is squeezed)
    x_lengths: unused by the computation (kept for signature parity)
    max_len:   optional static expanded length; pass it to avoid a host sync
               and keep the wrapper jit-able.
    Returns (output (B, C, max_len) float32, frame_lengths (B,) int32).
    """
    del x_lengths, hoplen, sr
    if duration.ndim == 3:
        duration = jnp.squeeze(duration, axis=1)

    B, C, T = x.shape
    dur = jnp.maximum(duration.astype(jnp.int32), 0)   # torch: max(int(d), 0)
    cum_true = jnp.cumsum(dur, axis=-1).astype(jnp.int32)
    frame_lengths = cum_true[:, -1]
    # TODO(synk): torch returns LongTensor (int64); int32 here (JAX x64 off).

    if max_len is None:
        # TODO(synk): host sync + per-length recompile; pass a static max_len
        # (or a bucketed upper bound) to keep this jit-able.
        max_len = int(np.asarray(jax.device_get(frame_lengths)).max())
    max_len = max(int(max_len), 1)

    # Pad the input time axis to a multiple of tile_k; padded steps get
    # duration 0 and therefore contribute nothing.
    T_pad = _round_up(T, tile_k)
    if T_pad != T:
        dur_p = jnp.pad(dur, ((0, 0), (0, T_pad - T)))
        x_p = jnp.pad(x, ((0, 0), (0, 0), (0, T_pad - T)))
    else:
        dur_p, x_p = dur, x
    cum_p = jnp.cumsum(dur_p, axis=-1).astype(jnp.int32)
    start_p = (cum_p - dur_p).astype(jnp.int32)

    # Lane-dense padded output length; sliced back to max_len at the end.
    L_pad = _round_up(max_len, tile_n)
    KB = T_pad // tile_k
    J = L_pad // tile_n

    # Per-(batch, K-block) output-frame coverage bounds for block-sparse skip
    # (starts/cum are monotone, so first-start / last-cum bound the block).
    blk_lo = start_p.reshape(B, KB, tile_k)[:, :, 0]      # (B, KB) int32
    blk_hi = cum_p.reshape(B, KB, tile_k)[:, :, -1]       # (B, KB) int32

    cum3 = cum_p[..., None]     # (B, T_pad, 1) -> lane-broadcastable in-kernel
    dur3 = dur_p[..., None].astype(jnp.int32)

    out_padded = pl.pallas_call(
        _lr_kernel,
        out_shape=jax.ShapeDtypeStruct((B, C, L_pad), jnp.float32),
        grid_spec=pltpu.PrefetchScalarGridSpec(
            num_scalar_prefetch=2,
            grid=(B, J, KB),
            in_specs=[
                pl.BlockSpec((1, C, tile_k), lambda b, j, k, lo, hi: (b, 0, k)),
                pl.BlockSpec((1, tile_k, 1), lambda b, j, k, lo, hi: (b, k, 0)),
                pl.BlockSpec((1, tile_k, 1), lambda b, j, k, lo, hi: (b, k, 0)),
            ],
            out_specs=pl.BlockSpec((1, C, tile_n),
                                   lambda b, j, k, lo, hi: (b, j, 0)),
        ),
        compiler_params=pltpu.CompilerParams(
            dimension_semantics=("parallel", "parallel", "arbitrary"),
            vmem_limit_bytes=32 * 1024 * 1024,
        ),
    )(blk_lo, blk_hi, x_p, cum3, dur3)

    # Trim the lane-padding back to the true max expanded length so the output
    # shape matches the PyTorch module exactly.
    out = out_padded[:, :, :max_len]
    return out, frame_lengths


def _numpy_reference(x, duration):
    """Direct port of the PyTorch loop for verification."""
    x = np.asarray(x, dtype=np.float32)
    duration = np.asarray(duration)
    B, C, T = x.shape
    expanded = []
    lens = []
    for b in range(B):
        rows = []
        for i in range(T):
            n = max(int(duration[b, i]), 0)
            if n > 0:
                rows.append(np.repeat(x[b, :, i][None, :], n, axis=0))
        e = np.concatenate(rows, axis=0) if rows else np.zeros((0, C), np.float32)
        expanded.append(e)
        lens.append(e.shape[0])
    max_len = max(max(lens), 1)
    out = np.zeros((B, max_len, C), dtype=np.float32)
    for b in range(B):
        out[b, : lens[b], :] = expanded[b]
    return np.transpose(out, (0, 2, 1)), np.array(lens)


if __name__ == "__main__":
    key = jax.random.PRNGKey(0)
    kx, kd = jax.random.split(key)

    B, C, T = 2, 32, 8
    x = jax.random.normal(kx, (B, C, T), dtype=jnp.float32)
    duration = jax.random.randint(kd, (B, T), minval=0, maxval=5, dtype=jnp.int32)
    x_lengths = jnp.full((B,), T, dtype=jnp.int32)

    out, frame_lengths = length_regulator(x, duration, x_lengths, hoplen=256, sr=22050)
    out = jax.block_until_ready(out)
    frame_lengths = jax.block_until_ready(frame_lengths)

    ref_out, ref_lens = _numpy_reference(np.asarray(x), np.asarray(duration))
    assert out.shape == ref_out.shape, (out.shape, ref_out.shape)
    np.testing.assert_allclose(np.asarray(out), ref_out, rtol=1e-5, atol=1e-5)
    np.testing.assert_array_equal(np.asarray(frame_lengths), ref_lens)

    print("KERNEL_OK")
</pallas_src>

<mosaic_0001>
module attributes {stable_mosaic.version = 11 : i64} {
  func.func @_lr_kernel(%arg0: i32, %arg1: i32, %arg2: i32, %arg3: memref<2x1xi32, #tpu.memory_space<smem>>, %arg4: memref<2x1xi32, #tpu.memory_space<smem>>, %arg5: memref<1x32x128xf32, #tpu.memory_space<vmem>>, %arg6: memref<1x128x1xi32, #tpu.memory_space<vmem>>, %arg7: memref<1x128x1xi32, #tpu.memory_space<vmem>>, %arg8: memref<1x32x256xf32, #tpu.memory_space<vmem>>) attributes {dimension_semantics = [#tpu.dimension_semantics<parallel>, #tpu.dimension_semantics<parallel>, #tpu.dimension_semantics<arbitrary>], iteration_bounds = array<i64: 2, 1, 1>, scalar_prefetch = 2 : i64, scratch_operands = 0 : i64, tpu.core_type = #tpu.core_type<tc>, window_params = [{transform_indices = @transform_0, window_bounds = array<i64: 1, 32, 128>}, {transform_indices = @transform_1, window_bounds = array<i64: 1, 128, 1>}, {transform_indices = @transform_2, window_bounds = array<i64: 1, 128, 1>}, {transform_indices = @transform_3, window_bounds = array<i64: 1, 32, 256>}]} {
    %c256_i32 = arith.constant 256 : i32
    %0 = arith.muli %arg1, %c256_i32 : i32
    %c256_i32_0 = arith.constant 256 : i32
    %1 = arith.addi %0, %c256_i32_0 : i32
    %c0_i32 = arith.constant 0 : i32
    %2 = arith.cmpi eq, %arg2, %c0_i32 : i32
    %3 = arith.extui %2 : i1 to i32
    %c0_i32_1 = arith.constant 0 : i32
    %4 = arith.cmpi ne, %3, %c0_i32_1 : i32
    scf.if %4 {
      %cst = arith.constant 0.000000e+00 : f32
      %16 = vector.broadcast %cst : f32 to vector<1x32x256xf32>
      %c0 = arith.constant 0 : index
      %c0_3 = arith.constant 0 : index
      %c0_4 = arith.constant 0 : index
      %17 = vector.load %arg8[%c0, %c0_3, %c0_4] : memref<1x32x256xf32, #tpu.memory_space<vmem>>, vector<1x32x256xf32>
      tpu.vector_store %arg8[%c0, %c0_3, %c0_4], %16 {strides = array<i32>} : memref<1x32x256xf32, #tpu.memory_space<vmem>>, vector<1x32x256xf32>,
    } else {
    }
    %5 = arith.index_cast %arg0 : i32 to index
    %6 = arith.index_cast %arg2 : i32 to index
    %7 = memref.load %arg3[%5, %6] : memref<2x1xi32, #tpu.memory_space<smem>>
    %8 = arith.index_cast %arg0 : i32 to index
    %9 = arith.index_cast %arg2 : i32 to index
    %10 = memref.load %arg4[%8, %9] : memref<2x1xi32, #tpu.memory_space<smem>>
    %11 = arith.cmpi slt, %7, %1 : i32
    %12 = arith.cmpi sgt, %10, %0 : i32
    %13 = arith.andi %11, %12 : i1
    %14 = arith.extui %13 : i1 to i32
    %c0_i32_2 = arith.constant 0 : i32
    %15 = arith.cmpi ne, %14, %c0_i32_2 : i32
    scf.if %15 {
      %c0 = arith.constant 0 : index
      %c0_3 = arith.constant 0 : index
      %c0_4 = arith.constant 0 : index
      %16 = vector.load %arg6[%c0, %c0_3, %c0_4] : memref<1x128x1xi32, #tpu.memory_space<vmem>>, vector<1x128x1xi32>
      %17 = vector.shape_cast %16 : vector<1x128x1xi32> to vector<128x1xi32>
      %c0_5 = arith.constant 0 : index
      %c0_6 = arith.constant 0 : index
      %c0_7 = arith.constant 0 : index
      %18 = vector.load %arg7[%c0_5, %c0_6, %c0_7] : memref<1x128x1xi32, #tpu.memory_space<vmem>>, vector<1x128x1xi32>
      %19 = vector.shape_cast %18 : vector<1x128x1xi32> to vector<128x1xi32>
      %20 = arith.subi %17, %19 : vector<128x1xi32>
      %21 = tpu.iota {dimensions = array<i32: 1>} : vector<128x256xi32>
      %22 = vector.broadcast %0 : i32 to vector<128x256xi32>
      %23 = arith.addi %22, %21 : vector<128x256xi32>
      %24 = vector.broadcast %20 : vector<128x1xi32> to vector<128x256xi32>
      %25 = arith.subi %23, %24 : vector<128x256xi32>
      %26 = vector.broadcast %19 : vector<128x1xi32> to vector<128x256xi32>
      %27 = arith.cmpi ult, %25, %26 : vector<128x256xi32>
      %28 = arith.extui %27 : vector<128x256xi1> to vector<128x256xi32>
      %29 = arith.sitofp %28 : vector<128x256xi32> to vector<128x256xf32>
      %c0_8 = arith.constant 0 : index
      %c0_9 = arith.constant 0 : index
      %c0_10 = arith.constant 0 : index
      %30 = vector.load %arg8[%c0_8, %c0_9, %c0_10] : memref<1x32x256xf32, #tpu.memory_space<vmem>>, vector<1x32x256xf32>
      %31 = vector.shape_cast %30 : vector<1x32x256xf32> to vector<32x256xf32>
      %c0_11 = arith.constant 0 : index
      %c0_12 = arith.constant 0 : index
      %c0_13 = arith.constant 0 : index
      %32 = vector.load %arg5[%c0_11, %c0_12, %c0_13] : memref<1x32x128xf32, #tpu.memory_space<vmem>>, vector<1x32x128xf32>
      %33 = vector.shape_cast %32 : vector<1x32x128xf32> to vector<32x128xf32>
      %cst = arith.constant dense<0.000000e+00> : vector<32x256xf32>
      %34 = tpu.matmul %33, %29, %cst {dimension_numbers = #tpu.dot_dimension_numbers<[1], [0], [0], [1], [0, 0, 1, 1], [], []>} : vector<32x128xf32>, vector<128x256xf32>, vector<32x256xf32> -> vector<32x256xf32>
      %35 = arith.addf %31, %34 : vector<32x256xf32>
      %c0_14 = arith.constant 0 : index
      %c0_15 = arith.constant 0 : index
      %c0_16 = arith.constant 0 : index
      %36 = vector.load %arg8[%c0_14, %c0_15, %c0_16] : memref<1x32x256xf32, #tpu.memory_space<vmem>>, vector<1x32x256xf32>
      %37 = vector.shape_cast %36 : vector<1x32x256xf32> to vector<32x256xf32>
      %38 = vector.shape_cast %35 : vector<32x256xf32> to vector<1x32x256xf32>
      tpu.vector_store %arg8[%c0_14, %c0_15, %c0_16], %38 {strides = array<i32>} : memref<1x32x256xf32, #tpu.memory_space<vmem>>, vector<1x32x256xf32>,
    } else {
    }
    return
  }
  func.func @transform_0(%arg0: i32, %arg1: i32, %arg2: i32, %arg3: memref<2x1xi32, #tpu.memory_space<smem>>, %arg4: memref<2x1xi32, #tpu.memory_space<smem>>) -> (i32, i32, i32) {
    %c0_i32 = arith.constant 0 : i32
    %c0_i32_0 = arith.constant 0 : i32
    return %arg0, %c0_i32, %arg2 : i32, i32, i32
  }
  func.func @transform_1(%arg0: i32, %arg1: i32, %arg2: i32, %arg3: memref<2x1xi32, #tpu.memory_space<smem>>, %arg4: memref<2x1xi32, #tpu.memory_space<smem>>) -> (i32, i32, i32) {
    %c0_i32 = arith.constant 0 : i32
    %c0_i32_0 = arith.constant 0 : i32
    return %arg0, %arg2, %c0_i32 : i32, i32, i32
  }
  func.func @transform_2(%arg0: i32, %arg1: i32, %arg2: i32, %arg3: memref<2x1xi32, #tpu.memory_space<smem>>, %arg4: memref<2x1xi32, #tpu.memory_space<smem>>) -> (i32, i32, i32) {
    %c0_i32 = arith.constant 0 : i32
    %c0_i32_0 = arith.constant 0 : i32
    return %arg0, %arg2, %c0_i32 : i32, i32, i32
  }
  func.func @transform_3(%arg0: i32, %arg1: i32, %arg2: i32, %arg3: memref<2x1xi32, #tpu.memory_space<smem>>, %arg4: memref<2x1xi32, #tpu.memory_space<smem>>) -> (i32, i32, i32) {
    %c0_i32 = arith.constant 0 : i32
    %c0_i32_0 = arith.constant 0 : i32
    return %arg0, %arg1, %c0_i32 : i32, i32, i32
  }
}

</mosaic_0001>

<bundles_post_ra>
// kernel: tpu_custom_call.1
= control target key start
LH: loop header
LB: loop body
LE: loop exit
PB: predicated region body
PF: predicated region fallthrough
CT: control target
= control target key end

     0   :  { %s1236_s24 = smov [#allocation3]   ;;  %s1237_s25 = smov [#allocation4]   ;;  %s1557_s0 = inlined_call_operand.vmem [shape: s32[2,1], index: 0, kind: input, shape index: {}]   ;;  %s1558_s2 = inlined_call_operand.vmem [shape: f32[2,32,128], index: 2, kind: input, shape index: {}]   ;;  %s1559_s3 = inlined_call_operand.vmem [shape: s32[2,128,1], index: 3, kind: input, shape index: {}]   ;;  %s1560_s4 = inlined_call_operand.vmem [shape: s32[2,128,1], index: 4, kind: input, shape index: {}]   ;;  %s1561_s5 = inlined_call_operand.hbm [shape: f32[2,32,256], index: 5, kind: output, shape index: {}]   ;;  %s1562_s1 = inlined_call_operand.vmem [shape: s32[2,1], index: 1, kind: input, shape index: {}]  }
   0x1   :  { %s11_s20 = sshll.u32 %s1557_s0, 4  ;;  %s16_s23 = sshll.u32 %s1562_s1, 4  ;;  %s12_s20 = int_to_ptr.vmem [resolvable:$true] %s11_s20  ;;  %s17_s23 = int_to_ptr.vmem [resolvable:$true] %s16_s23 }
   0x2   :  { %14 = dma.vmem_to_smem %s12_s20, 32, %s1236_s24, [#allocation2] }
   0x3   :  { %19 = dma.vmem_to_smem %s17_s23, 32, %s1237_s25, [#allocation2] }
   0x4   :  { %1206 = dma.done.wait [#allocation2], 64 }
   0x5   :  { %1207 = vsyncadd [#allocation2], 4294967232 }
   0x6   :  { %22 = sfence }
   0x7   :  { %23 = vsyncpa [#allocation6], 0 }
   0x8   :  { %25 = vsyncpa [#allocation6 + $0x1], 0  ;;  %s1279_s26 = smov 0   ;;  %s1281_s27 = smov 0  }
   0x9   :  { %s1283_s0 = smov 0   ;;  %s1285_s28 = smov 0  }
   0xa   :  { %s1287_s1 = smov 0   ;;  %s1289_s29 = smov 0  }
   0xb LB: > { %s883_s30 = sadd.s32 4294967295, %s1234_s29   ;;  %s884_s6 = sadd.s32 4294967294, %s1234_s29   ;;  %s1234_s29 = sphi %s1289_s29, %s31_s29   ;;  %s1230_s1 = sphi %s1287_s1, %s1569_s1   ;;  %s1226_s28 = sphi %s1285_s28, %s1568_s28   ;;  %s1222_s0 = sphi %s1283_s0, %s1567_s0   ;;  %s1218_s27 = sphi %s1281_s27, %s1566_s27   ;;  %s1214_s26 = sphi %s1279_s26, %s1565_s26  }
   0xc   : > { %s50_s7 = sadd.s32 1, %s1230_s1  ;;  %s143_s8 = sadd.s32 1, %s1222_s0 }
   0xd   : > { %p52_p0 = scmp.ge.s32.totalorder %s50_s7, 2  ;;  %p153_p1 = scmp.ne.s32.totalorder %s1222_s0, %s1218_s27 }
   0xe   : > { %p154_p2 = scmp.eq.s32.totalorder %s883_s30, 1  ;;  %p159_p3 = scmp.ne.s32.totalorder %s1218_s27, %s1214_s26 }
   0xf   : > { %s1571_s7 = smov (%p52_p0, %s50_s7), 0  ;;  %p160_p5 = scmp.eq.s32.totalorder %s884_s6, 1 }
  0x10   : > { %p1319_p4 = por %p154_p2, %p153_p1  ;;  %s138_s10 = ssub.s32 %s1230_s1, %s1571_s7 }
  0x11   : > { %p887_p6 = scmp.ge.s32.totalorder %s1234_s29, 1  ;;  %p141_p7 = scmp.eq.s32.totalorder %s138_s10, 0 }
  0x12   : > { %p1326_p8 = por %p160_p5, %p159_p3  ;;  %p215_p9 = scmp.lt.s32.totalorder %s1234_s29, 3 }
  0x13   : > { %s1332_s12 = scalar_select %p141_p7, %s1222_s0, %s143_s8  }
  0x14   : > { %p216_p10 = pnand %p887_p6, %p215_p9 }
  0x15   : > { %s257_s13 = sand.u32 (!%p216_p10), 1, %s1218_s27   ;;  %p260_p11 = scmp.lt.s32.totalorder (!%p216_p10), %s1226_s28, 1 }
  0x16   : > { %219 = sbr.rel (%p216_p10) target bundleno = 407 (0x197), region = 32  ;;  %s888_s14 = sshll.u32 (!%p216_p10), %s257_s13, 6 }
  0x17   : > { %s895_s15 = sshll.u32 (!%p216_p10), %s1226_s28, 7  ;;  %s1340_s18 = scalar_lea.vmem (!%p216_p10), [#allocation5], %s888_s14 }
  0x18   : > { %s310_s16 = sld [smem:[#allocation3 + %s895_s15]] (!%p216_p10) }
  0x19   : > { %s311_s19 = sld [smem:[#allocation4 + %s895_s15]] (!%p216_p10) }
  0x1b   : > { %s261_s17 = scalar_select %p260_p11, %s1226_s28, 1  ;;  %v1238_v0 = vmov 0.0  }
  0x1c   : > { %295 = vst [vmem:[%s1340_s18] sm:$0xff] %v1238_v0 }
  0x1d   : > { %296 = vst [vmem:[%s1340_s18 + $0x8] sm:$0xff] %v1238_v0  ;;  %s1029_s20 = sshll.u32 %s261_s17, 5  ;;  %s1030_s21 = sshll.u32 %s261_s17, 7 }
  0x1e   : > { %297 = vst [vmem:[%s1340_s18 + $0x10] sm:$0xff] %v1238_v0  ;;  %s1348_s24 = scalar_lea.vmem %s1558_s2, %s1029_s20  ;;  %s1353_s6 = scalar_lea.vmem %s1559_s3, %s1030_s21 }
  0x1f   : > { %298 = vst [vmem:[%s1340_s18 + $0x18] sm:$0xff] %v1238_v0  ;;  %s1359_s14 = scalar_lea.vmem %s1560_s4, %s1030_s21  ;;  %p312_p12 = scmp.lt.s32.totalorder %s310_s16, 256 }
  0x20   : > { %299 = vst [vmem:[%s1340_s18 + $0x20] sm:$0xff] %v1238_v0  ;;  %p313_p13 = scmp.gt.s32.totalorder %s311_s19, 0 }
  0x21   : > { %300 = vst [vmem:[%s1340_s18 + $0x28] sm:$0xff] %v1238_v0 }
  0x22   : > { %301 = vst [vmem:[%s1340_s18 + $0x30] sm:$0xff] %v1238_v0  ;;  %p314_p0 = pnand %p313_p13, %p312_p12 }
  0x23   : > { %302 = vst [vmem:[%s1340_s18 + $0x38] sm:$0xff] %v1238_v0 }
  0x24   : > { %317 = sbr.rel (%p314_p0) target bundleno = 391 (0x187), region = 40 }
  0x29   : > { %v349_v1 = vld [vmem:[%s1359_s14 + $0x78] sm:$0xff]  ;;  %v348_v2 = vld [vmem:[%s1359_s14 + $0x70] sm:$0xff]  ;;  %v1239_v3 = vmov 0   ;;  %v331_v6 = vld [vmem:[%s1353_s6 + $0x68] sm:$0xff]  ;;  %v366_v51 = vlaneseq  ;;  %v1240_v63 = vmov 1.0  }
  0x2a   : > { %1129 = vset.pattern.permute.xlu2 %v1239_v3  ;;  %1128 = vset.pattern.permute.xlu1 %v1239_v3  ;;  %v333_v4 = vld [vmem:[%s1353_s6 + $0x78] sm:$0xff]  ;;  %v347_v7 = vld [vmem:[%s1359_s14 + $0x68] sm:$0xff]  ;;  %v330_v8 = vld [vmem:[%s1353_s6 + $0x60] sm:$0xff] }
  0x2b   : > { %1127 = vset.pattern.permute.xlu0 %v1239_v3  ;;  %498 = vperm.xlu1 %1128, %v349_v1   ;;  %v365_v5 = vsub.s32 %v333_v4, %v349_v1  ;;  %v346_v9 = vld [vmem:[%s1359_s14 + $0x60] sm:$0xff]  ;;  %v332_v10 = vld [vmem:[%s1353_s6 + $0x70] sm:$0xff]  ;;  %v363_v11 = vsub.s32 %v331_v6, %v347_v7  ;;  %v329_v14 = vld [vmem:[%s1353_s6 + $0x58] sm:$0xff]  ;;  %v1397_v53 = vand.u32 127, %v366_v51 }
  0x2c   : > { %495 = vperm.xlu2 %1129, %v348_v2   ;;  %v362_v12 = vsub.s32 %v330_v8, %v346_v9  ;;  %v364_v13 = vsub.s32 %v332_v10, %v348_v2  ;;  %v345_v15 = vld [vmem:[%s1359_s14 + $0x58] sm:$0xff]  ;;  %v327_v17 = vld [vmem:[%s1353_s6 + $0x48] sm:$0xff]  ;;  %v328_v19 = vld [vmem:[%s1353_s6 + $0x50] sm:$0xff] }
  0x2d   : > { %418 = vperm.xlu0 %1127, %v365_v5   ;;  %v361_v16 = vsub.s32 %v329_v14, %v345_v15  ;;  %v343_v18 = vld [vmem:[%s1359_s14 + $0x48] sm:$0xff]  ;;  %v344_v20 = vld [vmem:[%s1359_s14 + $0x50] sm:$0xff]  ;;  %v326_v23 = vld [vmem:[%s1353_s6 + $0x40] sm:$0xff]  ;;  %v1400_v54 = vadd.s32 128, %v1397_v53 }
  0x2e   : > { %v359_v21 = vsub.s32 %v327_v17, %v343_v18  ;;  %v360_v22 = vsub.s32 %v328_v19, %v344_v20  ;;  %v342_v24 = vld [vmem:[%s1359_s14 + $0x40] sm:$0xff]  ;;  %v324_v26 = vld [vmem:[%s1353_s6 + $0x30] sm:$0xff]  ;;  %v325_v28 = vld [vmem:[%s1353_s6 + $0x38] sm:$0xff] }
  0x2f   : > { %v358_v25 = vsub.s32 %v326_v23, %v342_v24  ;;  %v340_v27 = vld [vmem:[%s1359_s14 + $0x30] sm:$0xff]  ;;  %v341_v29 = vld [vmem:[%s1359_s14 + $0x38] sm:$0xff]  ;;  %v323_v32 = vld [vmem:[%s1353_s6 + $0x28] sm:$0xff] }
  0x30   : > { %v356_v30 = vsub.s32 %v324_v26, %v340_v27  ;;  %v357_v31 = vsub.s32 %v325_v28, %v341_v29  ;;  %v339_v33 = vld [vmem:[%s1359_s14 + $0x28] sm:$0xff]  ;;  %v321_v35 = vld [vmem:[%s1353_s6 + $0x18] sm:$0xff]  ;;  %v322_v37 = vld [vmem:[%s1353_s6 + $0x20] sm:$0xff] }
  0x31   : > { %v355_v34 = vsub.s32 %v323_v32, %v339_v33  ;;  %v337_v36 = vld [vmem:[%s1359_s14 + $0x18] sm:$0xff]  ;;  %v338_v38 = vld [vmem:[%s1359_s14 + $0x20] sm:$0xff]  ;;  %v320_v41 = vld [vmem:[%s1353_s6 + $0x10] sm:$0xff] }
  0x32   : > { %v353_v39 = vsub.s32 %v321_v35, %v337_v36  ;;  %v354_v40 = vsub.s32 %v322_v37, %v338_v38  ;;  %v336_v42 = vld [vmem:[%s1359_s14 + $0x10] sm:$0xff]  ;;  %v318_v44 = vld [vmem:[%s1353_s6] sm:$0xff]  ;;  %v319_v46 = vld [vmem:[%s1353_s6 + $0x8] sm:$0xff] }
  0x33   : > { %412 = vperm.xlu1 %1128, %v363_v11   ;;  %v352_v43 = vsub.s32 %v320_v41, %v336_v42  ;;  %v334_v45 = vld [vmem:[%s1359_s14] sm:$0xff]  ;;  %v335_v47 = vld [vmem:[%s1359_s14 + $0x8] sm:$0xff] }
  0x34   : > { %409 = vperm.xlu2 %1129, %v362_v12   ;;  %v350_v48 = vsub.s32 %v318_v44, %v334_v45  ;;  %v351_v49 = vsub.s32 %v319_v46, %v335_v47 }
  0x35   : > { %415 = vperm.xlu0 %1127, %v364_v13  }
  0x3b   : > { %406 = vperm.xlu1 %1128, %v361_v16  }
  0x3c   : > { %489 = vperm.xlu2 %1129, %v346_v9  }
  0x3d   : > { %492 = vperm.xlu0 %1127, %v347_v7  }
  0x43   : > { %486 = vperm.xlu1 %1128, %v345_v15  }
  0x44   : > { %400 = vperm.xlu2 %1129, %v359_v21  }
  0x45   : > { %403 = vperm.xlu0 %1127, %v360_v22  }
  0x4b   : > { %397 = vperm.xlu1 %1128, %v358_v25  }
  0x4c   : > { %480 = vperm.xlu2 %1129, %v343_v18  }
  0x4d   : > { %483 = vperm.xlu0 %1127, %v344_v20  }
  0x53   : > { %477 = vperm.xlu1 %1128, %v342_v24  }
  0x54   : > { %391 = vperm.xlu2 %1129, %v356_v30  }
  0x55   : > { %394 = vperm.xlu0 %1127, %v357_v31  }
  0x5b   : > { %388 = vperm.xlu1 %1128, %v355_v34  }
  0x5c   : > { %471 = vperm.xlu2 %1129, %v340_v27  }
  0x5d   : > { %474 = vperm.xlu0 %1127, %v341_v29  }
  0x63   : > { %468 = vperm.xlu1 %1128, %v339_v33  }
  0x64   : > { %382 = vperm.xlu2 %1129, %v353_v39  }
  0x65   : > { %385 = vperm.xlu0 %1127, %v354_v40  }
  0x6b   : > { %379 = vperm.xlu1 %1128, %v352_v43  }
  0x6c   : > { %462 = vperm.xlu2 %1129, %v337_v36  }
  0x6d   : > { %465 = vperm.xlu0 %1127, %v338_v38  }
  0x73   : > { %459 = vperm.xlu1 %1128, %v336_v42  }
  0x74   : > { %373 = vperm.xlu2 %1129, %v350_v48  }
  0x75   : > { %376 = vperm.xlu0 %1127, %v351_v49  }
  0x7b   : > { %453 = vperm.xlu1 %1128, %v334_v45  }
  0x7d   : > { %456 = vperm.xlu0 %1127, %v335_v47  }
  0x86   : > { %v496_v50 = vpop.permute.xlu2 %495 }
  0x87   : > { %v953_v4 = vxor.u32 2147483648, %v496_v50 }
  0x8e   : > { %v410_v52 = vpop.permute.xlu2 %409 }
  0x8f   : > { %v444_v7 = vsub.s32 %v1397_v53, %v410_v52  ;;  %v445_v11 = vsub.s32 %v1400_v54, %v410_v52 }
  0x91   : > { %v944_v13 = vxor.u32 2147483648, %v444_v7  ;;  %v946_v19 = vxor.u32 2147483648, %v445_v11 }
  0x96   : > { %v490_v60 = vpop.permute.xlu2 %489 }
  0x97   : > { %v945_v15 = vxor.u32 2147483648, %v490_v60 }
  0x99   : > { %vm574_vm6 = vcmp.lt.s32.totalorder %v944_v13, %v945_v15  ;;  %vm577_vm7 = vcmp.lt.s32.totalorder %v946_v19, %v945_v15 }
  0x9d   : > { %v499_v55 = vpop.permute.xlu1 %498 }
  0x9e   : > { %v957_v57 = vxor.u32 2147483648, %v499_v55  ;;  %v401_v8 = vpop.permute.xlu2 %400 }
  0x9f   : > { %v419_v56 = vpop.permute.xlu0 %418  ;;  %v438_v28 = vsub.s32 %v1397_v53, %v401_v8  ;;  %v439_v31 = vsub.s32 %v1400_v54, %v401_v8 }
  0xa0   : > { %v450_v58 = vsub.s32 %v1397_v53, %v419_v56  ;;  %v451_v59 = vsub.s32 %v1400_v54, %v419_v56 }
  0xa1   : > { %v932_v33 = vxor.u32 2147483648, %v438_v28  ;;  %v934_v40 = vxor.u32 2147483648, %v439_v31 }
  0xa2   : > { %v956_v61 = vxor.u32 2147483648, %v450_v58  ;;  %v958_v62 = vxor.u32 2147483648, %v451_v59 }
  0xa4   : > { %vm592_vm0 = vcmp.lt.s32.totalorder %v956_v61, %v957_v57  ;;  %vm595_vm1 = vcmp.lt.s32.totalorder %v958_v62, %v957_v57 }
  0xa5   : > { %992 = vmatpush.msk.msra.mxu0 %vm592_vm0, %v1240_v63  ;;  %1033 = vmatpush.msk.msra.mxu2 %vm592_vm0, %v1240_v63  ;;  %v413_v0 = vpop.permute.xlu1 %412 }
  0xa6   : > { %1008 = vmatpush.msk.msra.mxu1 %vm595_vm1, %v1240_v63  ;;  %1049 = vmatpush.msk.msra.mxu3 %vm595_vm1, %v1240_v63  ;;  %v446_v9 = vsub.s32 %v1397_v53, %v413_v0  ;;  %v447_v10 = vsub.s32 %v1400_v54, %v413_v0  ;;  %v481_v22 = vpop.permute.xlu2 %480 }
  0xa7   : > { %v416_v1 = vpop.permute.xlu0 %415  ;;  %v933_v36 = vxor.u32 2147483648, %v481_v22 }
  0xa8   : > { %v448_v2 = vsub.s32 %v1397_v53, %v416_v1  ;;  %v449_v3 = vsub.s32 %v1400_v54, %v416_v1  ;;  %v948_v16 = vxor.u32 2147483648, %v446_v9  ;;  %v950_v17 = vxor.u32 2147483648, %v447_v10 }
  0xa9   : > { %vm556_vm12 = vcmp.lt.s32.totalorder %v932_v33, %v933_v36  ;;  %vm559_vm13 = vcmp.lt.s32.totalorder %v934_v40, %v933_v36 }
  0xaa   : > { %v952_v5 = vxor.u32 2147483648, %v448_v2  ;;  %v954_v6 = vxor.u32 2147483648, %v449_v3 }
  0xac   : > { %vm586_vm2 = vcmp.lt.s32.totalorder %v952_v5, %v953_v4  ;;  %vm589_vm3 = vcmp.lt.s32.totalorder %v954_v6, %v953_v4 }
  0xad   : > { %993 = vmatpush.msk.msra.mxu0 %vm586_vm2, %v1240_v63  ;;  %1034 = vmatpush.msk.msra.mxu2 %vm586_vm2, %v1240_v63  ;;  %v407_v12 = vpop.permute.xlu1 %406 }
  0xae   : > { %1009 = vmatpush.msk.msra.mxu1 %vm589_vm3, %v1240_v63  ;;  %1050 = vmatpush.msk.msra.mxu3 %vm589_vm3, %v1240_v63  ;;  %v442_v20 = vsub.s32 %v1397_v53, %v407_v12  ;;  %v443_v21 = vsub.s32 %v1400_v54, %v407_v12  ;;  %v392_v34 = vpop.permute.xlu2 %391 }
  0xaf   : > { %v493_v14 = vpop.permute.xlu0 %492  ;;  %v432_v51 = vsub.s32 %v1397_v53, %v392_v34  ;;  %v433_v55 = vsub.s32 %v1400_v54, %v392_v34 }
  0xb0   : > { %v949_v18 = vxor.u32 2147483648, %v493_v14  ;;  %v940_v24 = vxor.u32 2147483648, %v442_v20  ;;  %v942_v25 = vxor.u32 2147483648, %v443_v21 }
  0xb1   : > { %v920_v61 = vxor.u32 2147483648, %v432_v51  ;;  %v922_v1 = vxor.u32 2147483648, %v433_v55 }
  0xb2   : > { %vm580_vm4 = vcmp.lt.s32.totalorder %v948_v16, %v949_v18  ;;  %vm583_vm5 = vcmp.lt.s32.totalorder %v950_v17, %v949_v18 }
  0xb3   : > { %994 = vmatpush.msk.msra.mxu0 %vm580_vm4, %v1240_v63  ;;  %1035 = vmatpush.msk.msra.mxu2 %vm580_vm4, %v1240_v63 }
  0xb4   : > { %1010 = vmatpush.msk.msra.mxu1 %vm583_vm5, %v1240_v63  ;;  %1051 = vmatpush.msk.msra.mxu3 %vm583_vm5, %v1240_v63 }
  0xb5   : > { %995 = vmatpush.msk.msra.mxu0 %vm574_vm6, %v1240_v63  ;;  %1036 = vmatpush.msk.msra.mxu2 %vm574_vm6, %v1240_v63  ;;  %v487_v23 = vpop.permute.xlu1 %486 }
  0xb6   : > { %1011 = vmatpush.msk.msra.mxu1 %vm577_vm7, %v1240_v63  ;;  %1052 = vmatpush.msk.msra.mxu3 %vm577_vm7, %v1240_v63  ;;  %v941_v26 = vxor.u32 2147483648, %v487_v23  ;;  %v472_v48 = vpop.permute.xlu2 %471 }
  0xb7   : > { %v404_v27 = vpop.permute.xlu0 %403  ;;  %v921_v57 = vxor.u32 2147483648, %v472_v48  ;;  %v664_v48 = vld [vmem:[%s1340_s18 + $0x20] sm:$0xff] }
  0xb8   : > { %vm568_vm8 = vcmp.lt.s32.totalorder %v940_v24, %v941_v26  ;;  %vm571_vm9 = vcmp.lt.s32.totalorder %v942_v25, %v941_v26  ;;  %v440_v29 = vsub.s32 %v1397_v53, %v404_v27  ;;  %v441_v30 = vsub.s32 %v1400_v54, %v404_v27 }
  0xb9   : > { %996 = vmatpush.msk.msra.mxu0 %vm568_vm8, %v1240_v63  ;;  %1037 = vmatpush.msk.msra.mxu2 %vm568_vm8, %v1240_v63  ;;  %vm538_vm2 = vcmp.lt.s32.totalorder %v920_v61, %v921_v57  ;;  %vm541_vm3 = vcmp.lt.s32.totalorder %v922_v1, %v921_v57  ;;  %v663_v57 = vld [vmem:[%s1340_s18 + $0x18] sm:$0xff] }
  0xba   : > { %1012 = vmatpush.msk.msra.mxu1 %vm571_vm9, %v1240_v63  ;;  %1053 = vmatpush.msk.msra.mxu3 %vm571_vm9, %v1240_v63  ;;  %v936_v37 = vxor.u32 2147483648, %v440_v29  ;;  %v938_v38 = vxor.u32 2147483648, %v441_v30 }
  0xbd   : > { %v398_v32 = vpop.permute.xlu1 %397 }
  0xbe   : > { %v436_v41 = vsub.s32 %v1397_v53, %v398_v32  ;;  %v437_v42 = vsub.s32 %v1400_v54, %v398_v32  ;;  %v383_v2 = vpop.permute.xlu2 %382 }
  0xbf   : > { %v484_v35 = vpop.permute.xlu0 %483  ;;  %v426_v10 = vsub.s32 %v1397_v53, %v383_v2  ;;  %v427_v13 = vsub.s32 %v1400_v54, %v383_v2 }
  0xc0   : > { %v937_v39 = vxor.u32 2147483648, %v484_v35  ;;  %v928_v44 = vxor.u32 2147483648, %v436_v41  ;;  %v930_v45 = vxor.u32 2147483648, %v437_v42  ;;  %v671_v41 = vld [vmem:[%s1348_s24 + $0x18] sm:$0xff]  ;;  %v669_v42 = vld [vmem:[%s1348_s24 + $0x8] sm:$0xff] }
  0xc1   : > { %v908_v19 = vxor.u32 2147483648, %v426_v10  ;;  %v910_v22 = vxor.u32 2147483648, %v427_v13 }
  0xc2   : > { %vm562_vm10 = vcmp.lt.s32.totalorder %v936_v37, %v937_v39  ;;  %vm565_vm11 = vcmp.lt.s32.totalorder %v938_v38, %v937_v39 }
  0xc3   : > { %997 = vmatpush.msk.msra.mxu0 %vm562_vm10, %v1240_v63  ;;  %1038 = vmatpush.msk.msra.mxu2 %vm562_vm10, %v1240_v63 }
  0xc4   : > { %1013 = vmatpush.msk.msra.mxu1 %vm565_vm11, %v1240_v63  ;;  %1054 = vmatpush.msk.msra.mxu3 %vm565_vm11, %v1240_v63 }
  0xc5   : > { %998 = vmatpush.msk.msra.mxu0 %vm556_vm12, %v1240_v63  ;;  %1039 = vmatpush.msk.msra.mxu2 %vm556_vm12, %v1240_v63  ;;  %v478_v43 = vpop.permute.xlu1 %477 }
  0xc6   : > { %1014 = vmatpush.msk.msra.mxu1 %vm559_vm13, %v1240_v63  ;;  %1055 = vmatpush.msk.msra.mxu3 %vm559_vm13, %v1240_v63  ;;  %v929_v46 = vxor.u32 2147483648, %v478_v43  ;;  %v463_v11 = vpop.permute.xlu2 %462  ;;  %v660_v43 = vld [vmem:[%s1340_s18] sm:$0xff] }
  0xc7   : > { %v395_v47 = vpop.permute.xlu0 %394  ;;  %v909_v15 = vxor.u32 2147483648, %v463_v11 }
  0xc8   : > { %vm550_vm14 = vcmp.lt.s32.totalorder %v928_v44, %v929_v46  ;;  %vm553_vm15 = vcmp.lt.s32.totalorder %v930_v45, %v929_v46  ;;  %v434_v49 = vsub.s32 %v1397_v53, %v395_v47  ;;  %v435_v50 = vsub.s32 %v1400_v54, %v395_v47  ;;  %v661_v44 = vld [vmem:[%s1340_s18 + $0x8] sm:$0xff] }
  0xc9   : > { %999 = vmatpush.msk.msra.mxu0 %vm550_vm14, %v1240_v63  ;;  %1040 = vmatpush.msk.msra.mxu2 %vm550_vm14, %v1240_v63  ;;  %vm520_vm8 = vcmp.lt.s32.totalorder %v908_v19, %v909_v15  ;;  %vm523_vm9 = vcmp.lt.s32.totalorder %v910_v22, %v909_v15 }
  0xca   : > { %1015 = vmatpush.msk.msra.mxu1 %vm553_vm15, %v1240_v63  ;;  %1056 = vmatpush.msk.msra.mxu3 %vm553_vm15, %v1240_v63  ;;  %v924_v58 = vxor.u32 2147483648, %v434_v49  ;;  %v926_v59 = vxor.u32 2147483648, %v435_v50  ;;  %v665_v49 = vld [vmem:[%s1340_s18 + $0x28] sm:$0xff] }
  0xcd   : > { %v389_v52 = vpop.permute.xlu1 %388 }
  0xce   : > { %v430_v62 = vsub.s32 %v1397_v53, %v389_v52  ;;  %v431_v0 = vsub.s32 %v1400_v54, %v389_v52  ;;  %v374_v28 = vpop.permute.xlu2 %373 }
  0xcf   : > { %v475_v56 = vpop.permute.xlu0 %474  ;;  %v420_v32 = vsub.s32 %v1397_v53, %v374_v28  ;;  %v421_v33 = vsub.s32 %v1400_v54, %v374_v28 }
  0xd0   : > { %v925_v60 = vxor.u32 2147483648, %v475_v56  ;;  %v916_v4 = vxor.u32 2147483648, %v430_v62  ;;  %v918_v5 = vxor.u32 2147483648, %v431_v0  ;;  %v662_v56 = vld [vmem:[%s1340_s18 + $0x10] sm:$0xff]  ;;  %v667_v0 = vld [vmem:[%s1340_s18 + $0x38] sm:$0xff] }
  0xd1   : > { %v896_v39 = vxor.u32 2147483648, %v420_v32  ;;  %v898_v40 = vxor.u32 2147483648, %v421_v33  ;;  %v666_v62 = vld [vmem:[%s1340_s18 + $0x30] sm:$0xff] }
  0xd2   : > { %vm544_vm0 = vcmp.lt.s32.totalorder %v924_v58, %v925_v60  ;;  %vm547_vm1 = vcmp.lt.s32.totalorder %v926_v59, %v925_v60 }
  0xd3   : > { %1000 = vmatpush.msk.msra.mxu0 %vm544_vm0, %v1240_v63  ;;  %1041 = vmatpush.msk.msra.mxu2 %vm544_vm0, %v1240_v63 }
  0xd4   : > { %1016 = vmatpush.msk.msra.mxu1 %vm547_vm1, %v1240_v63  ;;  %1057 = vmatpush.msk.msra.mxu3 %vm547_vm1, %v1240_v63 }
  0xd5   : > { %1001 = vmatpush.msk.msra.mxu0 %vm538_vm2, %v1240_v63  ;;  %1042 = vmatpush.msk.msra.mxu2 %vm538_vm2, %v1240_v63  ;;  %v469_v3 = vpop.permute.xlu1 %468 }
  0xd6   : > { %1017 = vmatpush.msk.msra.mxu1 %vm541_vm3, %v1240_v63  ;;  %1058 = vmatpush.msk.msra.mxu3 %vm541_vm3, %v1240_v63  ;;  %v917_v6 = vxor.u32 2147483648, %v469_v3 }
  0xd7   : > { %v386_v7 = vpop.permute.xlu0 %385 }
  0xd8   : > { %vm532_vm4 = vcmp.lt.s32.totalorder %v916_v4, %v917_v6  ;;  %vm535_vm5 = vcmp.lt.s32.totalorder %v918_v5, %v917_v6  ;;  %v428_v8 = vsub.s32 %v1397_v53, %v386_v7  ;;  %v429_v9 = vsub.s32 %v1400_v54, %v386_v7 }
  0xd9   : > { %1002 = vmatpush.msk.msra.mxu0 %vm532_vm4, %v1240_v63  ;;  %1043 = vmatpush.msk.msra.mxu2 %vm532_vm4, %v1240_v63 }
  0xda   : > { %1018 = vmatpush.msk.msra.mxu1 %vm535_vm5, %v1240_v63  ;;  %1059 = vmatpush.msk.msra.mxu3 %vm535_vm5, %v1240_v63  ;;  %v912_v16 = vxor.u32 2147483648, %v428_v8  ;;  %v914_v17 = vxor.u32 2147483648, %v429_v9 }
  0xdd   : > { %v380_v12 = vpop.permute.xlu1 %379 }
  0xde   : > { %v424_v20 = vsub.s32 %v1397_v53, %v380_v12  ;;  %v425_v21 = vsub.s32 %v1400_v54, %v380_v12 }
  0xdf   : > { %v466_v14 = vpop.permute.xlu0 %465 }
  0xe0   : > { %v913_v18 = vxor.u32 2147483648, %v466_v14  ;;  %v904_v24 = vxor.u32 2147483648, %v424_v20  ;;  %v906_v25 = vxor.u32 2147483648, %v425_v21 }
  0xe2   : > { %vm526_vm6 = vcmp.lt.s32.totalorder %v912_v16, %v913_v18  ;;  %vm529_vm7 = vcmp.lt.s32.totalorder %v914_v17, %v913_v18 }
  0xe3   : > { %1003 = vmatpush.msk.msra.mxu0 %vm526_vm6, %v1240_v63  ;;  %1044 = vmatpush.msk.msra.mxu2 %vm526_vm6, %v1240_v63 }
  0xe4   : > { %1019 = vmatpush.msk.msra.mxu1 %vm529_vm7, %v1240_v63  ;;  %1060 = vmatpush.msk.msra.mxu3 %vm529_vm7, %v1240_v63 }
  0xe5   : > { %1004 = vmatpush.msk.msra.mxu0 %vm520_vm8, %v1240_v63  ;;  %1045 = vmatpush.msk.msra.mxu2 %vm520_vm8, %v1240_v63  ;;  %v460_v23 = vpop.permute.xlu1 %459 }
  0xe6   : > { %1020 = vmatpush.msk.msra.mxu1 %vm523_vm9, %v1240_v63  ;;  %1061 = vmatpush.msk.msra.mxu3 %vm523_vm9, %v1240_v63  ;;  %v905_v26 = vxor.u32 2147483648, %v460_v23 }
  0xe7   : > { %v377_v27 = vpop.permute.xlu0 %376 }
  0xe8   : > { %vm514_vm10 = vcmp.lt.s32.totalorder %v904_v24, %v905_v26  ;;  %vm517_vm11 = vcmp.lt.s32.totalorder %v906_v25, %v905_v26  ;;  %v422_v29 = vsub.s32 %v1397_v53, %v377_v27  ;;  %v423_v30 = vsub.s32 %v1400_v54, %v377_v27  ;;  %v670_v53 = vld [vmem:[%s1348_s24 + $0x10] sm:$0xff]  ;;  %v668_v54 = vld [vmem:[%s1348_s24] sm:$0xff] }
  0xe9   : > { %1005 = vmatpush.msk.msra.mxu0 %vm514_vm10, %v1240_v63  ;;  %1046 = vmatpush.msk.msra.mxu2 %vm514_vm10, %v1240_v63 }
  0xea   : > { %1021 = vmatpush.msk.msra.mxu1 %vm517_vm11, %v1240_v63  ;;  %1062 = vmatpush.msk.msra.mxu3 %vm517_vm11, %v1240_v63  ;;  %v900_v35 = vxor.u32 2147483648, %v422_v29  ;;  %v902_v36 = vxor.u32 2147483648, %v423_v30 }
  0xed   : > { %v454_v31 = vpop.permute.xlu1 %453 }
  0xee   : > { %v897_v37 = vxor.u32 2147483648, %v454_v31 }
  0xef   : > { %v457_v34 = vpop.permute.xlu0 %456 }
  0xf0   : > { %v901_v38 = vxor.u32 2147483648, %v457_v34  ;;  %vm502_vm14 = vcmp.lt.s32.totalorder %v896_v39, %v897_v37  ;;  %vm505_vm15 = vcmp.lt.s32.totalorder %v898_v40, %v897_v37 }
  0xf2   : > { %vm508_vm12 = vcmp.lt.s32.totalorder %v900_v35, %v901_v38  ;;  %vm511_vm13 = vcmp.lt.s32.totalorder %v902_v36, %v901_v38 }
  0xf3   : > { %1006 = vmatpush.msk.msra.mxu0 %vm508_vm12, %v1240_v63  ;;  %1047 = vmatpush.msk.msra.mxu2 %vm508_vm12, %v1240_v63 }
  0xf4   : > { %1022 = vmatpush.msk.msra.mxu1 %vm511_vm13, %v1240_v63  ;;  %1063 = vmatpush.msk.msra.mxu3 %vm511_vm13, %v1240_v63 }
  0xf5   : > { %1007 = vmatpush.msk.msra.mxu0 %vm502_vm14, %v1240_v63  ;;  %1048 = vmatpush.msk.msra.mxu2 %vm502_vm14, %v1240_v63 }
  0xf6   : > { %1023 = vmatpush.msk.msra.mxu1 %vm505_vm15, %v1240_v63  ;;  %1064 = vmatpush.msk.msra.mxu3 %vm505_vm15, %v1240_v63 }
  0xf7   : > { %694 = vmatmul.f32.vlgmr.msra.gmra.mxu2 %v670_v53  ;;  %723 = vmatmul.f32.vlgmr.msra.gmra.mxu3 %v670_v53 }
  0xf8   : > { %688 = vmatmul.f32.vlgmr.msra.gmra.mxu0 %v668_v54  ;;  %717 = vmatmul.f32.vlgmr.msra.gmra.mxu1 %v668_v54 }
  0xff   : > { %697 = vmatmul.f32.gmra.mxu2 %v671_v41  ;;  %726 = vmatmul.f32.gmra.mxu3 %v671_v41 }
 0x100   : > { %691 = vmatmul.f32.gmra.mxu0 %v669_v42  ;;  %720 = vmatmul.f32.gmra.mxu1 %v669_v42 }
 0x175   : > { %v689_v63 = vpop.f32.mrf.mxu0  ;;  %v718_v45 = vpop.f32.mrf.mxu1 }
 0x176   : > { %v730_v46 = vadd.f32 %v689_v63, %v660_v43  ;;  %v731_v47 = vadd.f32 %v718_v45, %v661_v44 }
 0x178   : > { %738 = vst [vmem:[%s1340_s18] sm:$0xff] %v730_v46 }
 0x179   : > { %739 = vst [vmem:[%s1340_s18 + $0x8] sm:$0xff] %v731_v47 }
 0x17a   : > { %v695_v50 = vpop.f32.mrf.mxu2  ;;  %v724_v51 = vpop.f32.mrf.mxu3 }
 0x17b   : > { %v734_v52 = vadd.f32 %v695_v50, %v664_v48  ;;  %v735_v55 = vadd.f32 %v724_v51, %v665_v49 }
 0x17d   : > { %742 = vst [vmem:[%s1340_s18 + $0x20] sm:$0xff] %v734_v52  ;;  %v692_v58 = vpop.f32.mrf.mxu0  ;;  %v721_v59 = vpop.f32.mrf.mxu1 }
 0x17e   : > { %743 = vst [vmem:[%s1340_s18 + $0x28] sm:$0xff] %v735_v55  ;;  %v732_v60 = vadd.f32 %v692_v58, %v662_v56  ;;  %v733_v61 = vadd.f32 %v721_v59, %v663_v57 }
 0x180   : > { %740 = vst [vmem:[%s1340_s18 + $0x10] sm:$0xff] %v732_v60 }
 0x181   : > { %741 = vst [vmem:[%s1340_s18 + $0x18] sm:$0xff] %v733_v61 }
 0x182   : > { %v698_v1 = vpop.f32.mrf.mxu2  ;;  %v727_v2 = vpop.f32.mrf.mxu3 }
 0x183   : > { %v736_v3 = vadd.f32 %v698_v1, %v666_v62  ;;  %v737_v4 = vadd.f32 %v727_v2, %v667_v0 }
 0x185   : > { %744 = vst [vmem:[%s1340_s18 + $0x30] sm:$0xff] %v736_v3 }
 0x186   : > { %745 = vst [vmem:[%s1340_s18 + $0x38] sm:$0xff] %v737_v4 }
 0x187 PF: > { %s1032_s15 = sshll.u32 %s1226_s28, 6  ;;  %s762_s20 = sshll.u32 %s1340_s18, 4  ;;  %s763_s20 = int_to_ptr.vmem [resolvable:$true] %s762_s20 }
 0x188   : > { %s761_s19 = scalar_lea.hbm %s1561_s5, %s1032_s15  ;;  %s747_s22 = scalar_lea.sflag [#allocation6], %s257_s13 }
 0x189   : > { %s764_s21 = sshll.u32 %s761_s19, 4  ;;  %s1174_s28 = scalar_lea.hbm %s1561_s5, 128  ;;  %s765_s21 = int_to_ptr.hbm [resolvable:$true] %s764_s21 }
 0x18a   : > { %s1168_s23 = sshra.s32 %s765_s21, 4  ;;  %s1169_s23 = int_to_ptr.hbm [resolvable:$true] %s1168_s23 }
 0x18b   : > { %s1170_s24 = scalar_lea.hbm %s1169_s23, 64  ;;  %p1175_p5 = scmp.lt.s32.totalorder %s1169_s23, %s1561_s5 }
 0x18c   : > { %p1171_p1 = scmp.ne.s32.totalorder %s1169_s23, %s1170_s24  ;;  %p1176_p6 = scmp.lt.s32.totalorder %s1174_s28, %s1170_s24 }
 0x18e   : > { %p1172_p2 = pnand %p1171_p1, %p1319_p4  ;;  %p1177_p7 = por %p1176_p6, %p1175_p5 }
 0x190   : > { %p1173_p3 = pneg %p1172_p2 }
 0x192   : > { %p1178_p9 = pnand %p1177_p7, %p1173_p3 }
 0x194   : > { %1181 = shalt.err (!%p1178_p9)
}
 0x195   : > { %s1241_s13 = smov 256   ;;  %s1242_s18 = smov 16  }
 0x196   : > { %1065 = dma.vmem_to_hbm [thread:$0]  (%p1319_p4), %s763_s20, 1024, %s765_s21, %s747_s22, %s1241_s13, %s1241_s13, %s1242_s18  }
 0x197 PF: > { %p1071_p10 = scmp.ge.s32.totalorder %s1234_s29, 2  ;;  %s779_s10 = sand.u32 1, %s1214_s26  }
 0x198   : > { %s780_s14 = scalar_lea.sflag [#allocation6], %s779_s10 }
 0x199   : > { %p1068_p11 = pnand %p1071_p10, %p1326_p8 }
 0x19b   : > { %p1069_p12 = pneg %p1068_p11 }
 0x19d   : > { %1209 = dma.done.wait (%p1069_p12), %s780_s14, 1024  }
 0x19e   : > { %1211 = vsyncadd (%p1069_p12), %s780_s14, 4294966272  ;;  %s31_s29 = sadd.s32 1, %s1234_s29   ;;  %s1565_s26 = smov %s1218_s27 }
 0x19f   : > { %p28_p13 = scmp.ge.s32.totalorder %s31_s29, 4   ;;  %s1566_s27 = smov %s1222_s0 }
 0x1a0   : > { %s1567_s0 = smov %s1332_s12  ;;  %s1568_s28 = smov %s1230_s1 }
 0x1a1   : > { %s1569_s1 = smov %s1571_s7  ;;  %30 = sbr.rel (!%p28_p13) target bundleno = 11 (0xb), region = 81 }
 0x1a6   :  { %786 = vsyncpa [#allocation6], 1 }
 0x1a7   :  { %788 = vsyncpa [#allocation6 + $0x1], 1 }

</bundles_post_ra>
